<compile_context>
chip_gen: v6e
topology: v6e:2x2x1
jax: 0.10.0
libtpu: 0.0.40
codegen_flags: <defaults>
</compile_context>

<pallas_src>
import functools

import jax
import jax.numpy as jnp
from jax.experimental import pallas as pl
from jax.experimental.pallas import tpu as pltpu


_SQRT_2_OVER_PI = 0.7978845608028654


def _gelu_tanh(x):
    return 0.5 * x * (1.0 + jnp.tanh(_SQRT_2_OVER_PI * (x + 0.044715 * x * x * x)))


def feedforward_kernel(x_ref, ln_ref, w1_ref, b1_ref, w2_ref, b2_ref, out_ref,
                       *, eps):
    """One row-tile of flattened tokens per grid step; weights stay resident."""
    x = x_ref[...].astype(jnp.float32)                        # (tm, D)

    # LayerNorm in f32 (VPU + EUP rsqrt).
    mu = jnp.mean(x, axis=-1, keepdims=True)
    var = jnp.mean((x - mu) ** 2, axis=-1, keepdims=True)
    xn = (x - mu) * jax.lax.rsqrt(var + eps)
    xn = xn * ln_ref[0:1, :] + ln_ref[1:2, :]                  # gamma / beta

    # Linear(dim -> hidden): bf16 operands, f32 accumulation on the MXU.
    h = jnp.dot(xn.astype(jnp.bfloat16), w1_ref[...],
                preferred_element_type=jnp.float32) + b1_ref[...]

    # GELU (tanh approximation), f32.
    h = _gelu_tanh(h)

    # Dropout -> identity (eval mode).

    # Linear(hidden -> dim): bf16 operands, f32 accumulation.
    y = jnp.dot(h.astype(jnp.bfloat16), w2_ref[...],
                preferred_element_type=jnp.float32) + b2_ref[...]

    # Dropout -> identity (eval mode).
    out_ref[...] = y.astype(out_ref.dtype)


def _pick_block_rows(R):
    """Largest divisor of R that is a multiple of 8 and <= 256; else full R."""
    if R % 8 != 0:
        return R
    best = 8
    t = 8
    while t <= min(R, 256):
        if R % t == 0:
            best = t
        t += 8
    # Prefer >= 2 grid steps (megacore parallel axis) when possible.
    if best == R and R > 8:
        half = R // 2
        if half % 8 == 0:
            best = half
    return best


def feedforward_forward(x, params, *, eps=1e-5, block_rows=None):
    """x: (..., D). params = (gamma, beta, w1, b1, w2, b2); weights stored (in, out)."""
    gamma, beta, w1, b1, w2, b2 = params
    D = x.shape[-1]
    H = w1.shape[-1]
    lead = x.shape[:-1]
    R = 1
    for s in lead:
        R *= s
    x2d = x.reshape(R, D)

    if block_rows is None:
        block_rows = _pick_block_rows(R)
    if R % block_rows != 0:
        block_rows = R
    grid = (R // block_rows,)

    ln = jnp.stack([gamma, beta], axis=0).astype(jnp.float32)   # (2, D) packed
    w1b = w1.astype(jnp.bfloat16)
    w2b = w2.astype(jnp.bfloat16)
    b1r = b1.reshape(1, H).astype(jnp.float32)
    b2r = b2.reshape(1, D).astype(jnp.float32)

    kernel = functools.partial(feedforward_kernel, eps=eps)

    out2d = pl.pallas_call(
        kernel,
        out_shape=jax.ShapeDtypeStruct((R, D), x.dtype),
        grid_spec=pltpu.PrefetchScalarGridSpec(
            num_scalar_prefetch=0,
            grid=grid,
            in_specs=[
                pl.BlockSpec((block_rows, D), lambda i: (i, 0)),   # token rows
                pl.BlockSpec((2, D), lambda i: (0, 0)),            # gamma/beta
                pl.BlockSpec((D, H), lambda i: (0, 0)),            # W1 (in,out) bf16
                pl.BlockSpec((1, H), lambda i: (0, 0)),            # b1
                pl.BlockSpec((H, D), lambda i: (0, 0)),            # W2 (in,out) bf16
                pl.BlockSpec((1, D), lambda i: (0, 0)),            # b2
            ],
            out_specs=pl.BlockSpec((block_rows, D), lambda i: (i, 0)),
        ),
        compiler_params=pltpu.CompilerParams(
            dimension_semantics=("parallel",)),
    )(x2d, ln, w1b, b1r, w2b, b2r)

    return out2d.reshape(*lead, D)


def feedforward_reference(x, params, *, eps=1e-5):
    """Pure-JAX reference mirroring the PyTorch forward (eval mode), using the
    same bf16 matmul operands / f32 accumulation as the kernel."""
    gamma, beta, w1, b1, w2, b2 = params
    mu = jnp.mean(x, axis=-1, keepdims=True)
    var = jnp.mean((x - mu) ** 2, axis=-1, keepdims=True)
    xn = (x - mu) * jax.lax.rsqrt(var + eps) * gamma + beta
    h = jnp.dot(xn.astype(jnp.bfloat16), w1.astype(jnp.bfloat16),
                preferred_element_type=jnp.float32) + b1
    h = _gelu_tanh(h)
    y = jnp.dot(h.astype(jnp.bfloat16), w2.astype(jnp.bfloat16),
                preferred_element_type=jnp.float32) + b2
    return y.astype(x.dtype)


if __name__ == "__main__":
    # Small shapes; dim / hidden_dim chosen as multiples of 128 for lane-dense
    # loads/stores and full-width MXU operands.
    B, N, D, H = 2, 8, 128, 256

    key = jax.random.PRNGKey(0)
    keys = jax.random.split(key, 7)

    x = jax.random.normal(keys[0], (B, N, D), dtype=jnp.float32)

    gamma = 1.0 + 0.1 * jax.random.normal(keys[1], (D,), dtype=jnp.float32)
    beta = 0.1 * jax.random.normal(keys[2], (D,), dtype=jnp.float32)
    w1 = 0.05 * jax.random.normal(keys[3], (D, H), dtype=jnp.float32)
    b1 = 0.1 * jax.random.normal(keys[4], (H,), dtype=jnp.float32)
    w2 = 0.05 * jax.random.normal(keys[5], (H, D), dtype=jnp.float32)
    b2 = 0.1 * jax.random.normal(keys[6], (D,), dtype=jnp.float32)

    params = (gamma, beta, w1, b1, w2, b2)

    out = feedforward_forward(x, params)
    out = jax.block_until_ready(out)

    ref = feedforward_reference(x, params)
    assert out.shape == (B, N, D), out.shape
    assert jnp.allclose(out, ref, atol=5e-3, rtol=5e-3), (
        float(jnp.max(jnp.abs(out - ref))))

    print("KERNEL_OK")
</pallas_src>

<mosaic_0001>
module attributes {stable_mosaic.version = 11 : i64} {
  func.func @feedforward_kernel(%arg0: i32, %arg1: memref<8x128xf32, #tpu.memory_space<vmem>>, %arg2: memref<2x128xf32, #tpu.memory_space<vmem>>, %arg3: memref<128x256xbf16, #tpu.memory_space<vmem>>, %arg4: memref<1x256xf32, #tpu.memory_space<vmem>>, %arg5: memref<256x128xbf16, #tpu.memory_space<vmem>>, %arg6: memref<1x128xf32, #tpu.memory_space<vmem>>, %arg7: memref<8x128xf32, #tpu.memory_space<vmem>>) attributes {dimension_semantics = [#tpu.dimension_semantics<parallel>], iteration_bounds = array<i64: 2>, scalar_prefetch = 0 : i64, scratch_operands = 0 : i64, tpu.core_type = #tpu.core_type<tc>, window_params = [{transform_indices = @transform_0, window_bounds = array<i64: 8, 128>}, {pipeline_mode = #tpu.pipeline_mode<synchronous>, transform_indices = @transform_1, window_bounds = array<i64: 2, 128>}, {pipeline_mode = #tpu.pipeline_mode<synchronous>, transform_indices = @transform_2, window_bounds = array<i64: 128, 256>}, {pipeline_mode = #tpu.pipeline_mode<synchronous>, transform_indices = @transform_3, window_bounds = array<i64: 1, 256>}, {pipeline_mode = #tpu.pipeline_mode<synchronous>, transform_indices = @transform_4, window_bounds = array<i64: 256, 128>}, {pipeline_mode = #tpu.pipeline_mode<synchronous>, transform_indices = @transform_5, window_bounds = array<i64: 1, 128>}, {transform_indices = @transform_6, window_bounds = array<i64: 8, 128>}]} {
    %c0 = arith.constant 0 : index
    %c0_0 = arith.constant 0 : index
    %0 = vector.load %arg1[%c0, %c0_0] : memref<8x128xf32, #tpu.memory_space<vmem>>, vector<8x128xf32>
    %cst = arith.constant dense<0.000000e+00> : vector<8xf32>
    %1 = vector.multi_reduction <add>, %0, %cst [1] : vector<8x128xf32> to vector<8xf32>
    %2 = vector.shape_cast %1 : vector<8xf32> to vector<8x1xf32>
    %cst_1 = arith.constant 1.280000e+02 : f32
    %3 = vector.broadcast %cst_1 : f32 to vector<8x1xf32>
    %4 = arith.divf %2, %3 : vector<8x1xf32>
    %5 = vector.broadcast %4 : vector<8x1xf32> to vector<8x128xf32>
    %6 = arith.subf %0, %5 : vector<8x128xf32>
    %7 = arith.mulf %6, %6 : vector<8x128xf32>
    %cst_2 = arith.constant dense<0.000000e+00> : vector<8xf32>
    %8 = vector.multi_reduction <add>, %7, %cst_2 [1] : vector<8x128xf32> to vector<8xf32>
    %9 = vector.shape_cast %8 : vector<8xf32> to vector<8x1xf32>
    %cst_3 = arith.constant 1.280000e+02 : f32
    %10 = vector.broadcast %cst_3 : f32 to vector<8x1xf32>
    %11 = arith.divf %9, %10 : vector<8x1xf32>
    %12 = vector.broadcast %4 : vector<8x1xf32> to vector<8x128xf32>
    %13 = arith.subf %0, %12 : vector<8x128xf32>
    %cst_4 = arith.constant 9.99999974E-6 : f32
    %14 = vector.broadcast %cst_4 : f32 to vector<8x1xf32>
    %15 = arith.addf %11, %14 : vector<8x1xf32>
    %16 = math.rsqrt %15 : vector<8x1xf32>
    %17 = vector.broadcast %16 : vector<8x1xf32> to vector<8x128xf32>
    %18 = arith.mulf %13, %17 : vector<8x128xf32>
    %c0_5 = arith.constant 0 : index
    %c0_6 = arith.constant 0 : index
    %19 = vector.load %arg2[%c0_5, %c0_6] : memref<2x128xf32, #tpu.memory_space<vmem>>, vector<1x128xf32>
    %20 = vector.broadcast %19 : vector<1x128xf32> to vector<8x128xf32>
    %21 = arith.mulf %18, %20 : vector<8x128xf32>
    %c1 = arith.constant 1 : index
    %c0_7 = arith.constant 0 : index
    %22 = vector.load %arg2[%c1, %c0_7] : memref<2x128xf32, #tpu.memory_space<vmem>>, vector<1x128xf32>
    %23 = vector.broadcast %22 : vector<1x128xf32> to vector<8x128xf32>
    %24 = arith.addf %21, %23 : vector<8x128xf32>
    %25 = arith.truncf %24 : vector<8x128xf32> to vector<8x128xbf16>
    %c0_8 = arith.constant 0 : index
    %c0_9 = arith.constant 0 : index
    %26 = vector.load %arg3[%c0_8, %c0_9] : memref<128x256xbf16, #tpu.memory_space<vmem>>, vector<128x256xbf16>
    %cst_10 = arith.constant dense<0.000000e+00> : vector<8x256xf32>
    %27 = tpu.matmul %25, %26, %cst_10 {dimension_numbers = #tpu.dot_dimension_numbers<[1], [0], [0], [1], [0, 0, 1, 1], [], []>} : vector<8x128xbf16>, vector<128x256xbf16>, vector<8x256xf32> -> vector<8x256xf32>
    %c0_11 = arith.constant 0 : index
    %c0_12 = arith.constant 0 : index
    %28 = vector.load %arg4[%c0_11, %c0_12] : memref<1x256xf32, #tpu.memory_space<vmem>>, vector<1x256xf32>
    %29 = vector.broadcast %28 : vector<1x256xf32> to vector<8x256xf32>
    %30 = arith.addf %27, %29 : vector<8x256xf32>
    %cst_13 = arith.constant 5.000000e-01 : f32
    %31 = vector.broadcast %cst_13 : f32 to vector<8x256xf32>
    %32 = arith.mulf %31, %30 : vector<8x256xf32>
    %cst_14 = arith.constant 4.471500e-02 : f32
    %33 = vector.broadcast %cst_14 : f32 to vector<8x256xf32>
    %34 = arith.mulf %33, %30 : vector<8x256xf32>
    %35 = arith.mulf %34, %30 : vector<8x256xf32>
    %36 = arith.mulf %35, %30 : vector<8x256xf32>
    %37 = arith.addf %30, %36 : vector<8x256xf32>
    %cst_15 = arith.constant 0.797884583 : f32
    %38 = vector.broadcast %cst_15 : f32 to vector<8x256xf32>
    %39 = arith.mulf %38, %37 : vector<8x256xf32>
    %40 = math.tanh %39 : vector<8x256xf32>
    %cst_16 = arith.constant 1.000000e+00 : f32
    %41 = vector.broadcast %cst_16 : f32 to vector<8x256xf32>
    %42 = arith.addf %41, %40 : vector<8x256xf32>
    %43 = arith.mulf %32, %42 : vector<8x256xf32>
    %44 = arith.truncf %43 : vector<8x256xf32> to vector<8x256xbf16>
    %c0_17 = arith.constant 0 : index
    %c0_18 = arith.constant 0 : index
    %45 = vector.load %arg5[%c0_17, %c0_18] : memref<256x128xbf16, #tpu.memory_space<vmem>>, vector<256x128xbf16>
    %cst_19 = arith.constant dense<0.000000e+00> : vector<8x128xf32>
    %46 = tpu.matmul %44, %45, %cst_19 {dimension_numbers = #tpu.dot_dimension_numbers<[1], [0], [0], [1], [0, 0, 1, 1], [], []>} : vector<8x256xbf16>, vector<256x128xbf16>, vector<8x128xf32> -> vector<8x128xf32>
    %c0_20 = arith.constant 0 : index
    %c0_21 = arith.constant 0 : index
    %47 = vector.load %arg6[%c0_20, %c0_21] : memref<1x128xf32, #tpu.memory_space<vmem>>, vector<1x128xf32>
    %48 = vector.broadcast %47 : vector<1x128xf32> to vector<8x128xf32>
    %49 = arith.addf %46, %48 : vector<8x128xf32>
    %c0_22 = arith.constant 0 : index
    %c0_23 = arith.constant 0 : index
    %50 = vector.load %arg7[%c0_22, %c0_23] : memref<8x128xf32, #tpu.memory_space<vmem>>, vector<8x128xf32>
    tpu.vector_store %arg7[%c0_22, %c0_23], %49 {strides = array<i32>} : memref<8x128xf32, #tpu.memory_space<vmem>>, vector<8x128xf32>,
    return
  }
  func.func @transform_0(%arg0: i32) -> (i32, i32) {
    %c0_i32 = arith.constant 0 : i32
    %c0_i32_0 = arith.constant 0 : i32
    return %arg0, %c0_i32 : i32, i32
  }
  func.func @transform_1(%arg0: i32) -> (i32, i32) {
    %c0_i32 = arith.constant 0 : i32
    %c0_i32_0 = arith.constant 0 : i32
    %c0_i32_1 = arith.constant 0 : i32
    return %c0_i32, %c0_i32_0 : i32, i32
  }
  func.func @transform_2(%arg0: i32) -> (i32, i32) {
    %c0_i32 = arith.constant 0 : i32
    %c0_i32_0 = arith.constant 0 : i32
    %c0_i32_1 = arith.constant 0 : i32
    return %c0_i32, %c0_i32_0 : i32, i32
  }
  func.func @transform_3(%arg0: i32) -> (i32, i32) {
    %c0_i32 = arith.constant 0 : i32
    %c0_i32_0 = arith.constant 0 : i32
    %c0_i32_1 = arith.constant 0 : i32
    return %c0_i32, %c0_i32_0 : i32, i32
  }
  func.func @transform_4(%arg0: i32) -> (i32, i32) {
    %c0_i32 = arith.constant 0 : i32
    %c0_i32_0 = arith.constant 0 : i32
    %c0_i32_1 = arith.constant 0 : i32
    return %c0_i32, %c0_i32_0 : i32, i32
  }
  func.func @transform_5(%arg0: i32) -> (i32, i32) {
    %c0_i32 = arith.constant 0 : i32
    %c0_i32_0 = arith.constant 0 : i32
    %c0_i32_1 = arith.constant 0 : i32
    return %c0_i32, %c0_i32_0 : i32, i32
  }
  func.func @transform_6(%arg0: i32) -> (i32, i32) {
    %c0_i32 = arith.constant 0 : i32
    %c0_i32_0 = arith.constant 0 : i32
    return %arg0, %c0_i32 : i32, i32
  }
}

</mosaic_0001>

<bundles_post_ra>
// kernel: tpu_custom_call.1
= control target key start
LH: loop header
LB: loop body
LE: loop exit
PB: predicated region body
PF: predicated region fallthrough
CT: control target
= control target key end

     0   :  { %s1415_s0 = inlined_call_operand.hbm [shape: f32[16,128], index: 0, kind: input, shape index: {}]   ;;  %s1416_s1 = inlined_call_operand.hbm [shape: f32[2,128], index: 1, kind: input, shape index: {}]   ;;  %s1417_s2 = inlined_call_operand.hbm [shape: bf16[128,256], index: 2, kind: input, shape index: {}]   ;;  %s1418_s3 = inlined_call_operand.vmem [shape: f32[1,256], index: 3, kind: input, shape index: {}]   ;;  %s1419_s4 = inlined_call_operand.hbm [shape: bf16[256,128], index: 4, kind: input, shape index: {}]   ;;  %s1420_s5 = inlined_call_operand.vmem [shape: f32[1,128], index: 5, kind: input, shape index: {}]   ;;  %s1421_s6 = inlined_call_operand.hbm [shape: f32[16,128], index: 6, kind: output, shape index: {}]  }
   0x1   :  { %1426 = sst [smem:[#allocation15_spill]] %s1416_s1 }
   0x2   :  { %11 = vsyncpa [#allocation3], 0 }
   0x3   :  { %13 = vsyncpa [#allocation3 + $0x1], 0 }
   0x4   :  { %14 = vsyncpa [#allocation6], 0 }
   0x5   :  { %15 = vsyncpa [#allocation9], 0 }
   0x6   :  { %16 = vsyncpa [#allocation4], 0 }
   0x7   :  { %18 = vsyncpa [#allocation4 + $0x1], 0  ;;  %s1222_s21 = smov 0   ;;  %s1224_s22 = smov 0  }
   0x8   :  { %s1226_s23 = smov 0   ;;  %s1228_s24 = smov 0  }
   0x9 LB: > { %s1243_s25 = sadd.s32 4294967295, %s1175_s24   ;;  %s794_s26 = sadd.s32 4294967294, %s1175_s24   ;;  %s1175_s24 = sphi %s1228_s24, %s1447_s24   ;;  %s1171_s23 = sphi %s1226_s23, %s1446_s23   ;;  %s1167_s22 = sphi %s1224_s22, %s1445_s22   ;;  %s1163_s21 = sphi %s1222_s21, %s1444_s21  }
   0xa   : > { %p44_p0 = scmp.ne.s32.totalorder %s1167_s22, %s1163_s21  ;;  %p1422_p1 = scmp.eq.s32.totalorder %s1243_s25, 0 }
   0xb   : > { %p179_p3 = scmp.eq.s32.totalorder %s794_s26, 1  ;;  %p795_p5 = scmp.ge.s32.totalorder %s1175_s24, 1 }
   0xc   : > { %p1252_p4 = por %p1422_p1, %p44_p0  ;;  %p186_p7 = scmp.lt.s32.totalorder %s1175_s24, 3 }
   0xd   : > { %p1257_p6 = por %p179_p3, %p44_p0  ;;  %s1177_s30 = smov [#allocation5]  }
   0xe   : > { %s1427_s27 = scalar_select %p1252_p4, 1, 0 }
   0xf   : > { %s1428_s28 = scalar_select %p1257_p6, 1, 0 }
  0x10   : > { %p1262_p8 = pnand %p795_p5, %p186_p7  ;;  %s199_s7 = sshll.u32 %s1177_s30, 4  ;;  %s200_s7 = int_to_ptr.vmem [resolvable:$true] %s199_s7 }
  0x11   : > { %s1178_s8 = smov [#allocation7]   ;;  %s1179_s11 = smov [#allocation8]  }
  0x12   : > { %s1429_s29 = scalar_select %p1262_p8, 1, 0 }
  0x13   : > { %p885_p10 = pneg %p1262_p8  ;;  %s209_s9 = sshll.u32 %s1178_s8, 4  ;;  %s210_s9 = int_to_ptr.vmem [resolvable:$true] %s209_s9 }
  0x14   : > { %s225_s12 = sshll.u32 %s1179_s11, 4  ;;  %s1008_s13 = scalar_lea.vmem %s200_s7, 32  ;;  %s226_s12 = int_to_ptr.vmem [resolvable:$true] %s225_s12 }
  0x15   : > { %p1271_p11 = pnand %p885_p10, %p1422_p1  ;;  %p1009_p13 = scmp.ne.s32.totalorder %s200_s7, %s1008_s13 }
  0x16   : > { %p1016_p5 = scmp.lt.s32.totalorder %s200_s7, %s200_s7  ;;  %p1017_p7 = scmp.lt.s32.totalorder %s1008_s13, %s1008_s13 }
  0x17   : > { %p999_p12 = pneg %p1271_p11 }
  0x18   : > { %p1018_p9 = por %p1017_p7, %p1016_p5 }
  0x19   : > { %p1011_p0 = pnand %p1009_p13, %p999_p12 }
  0x1b   : > { %p1012_p3 = pneg %p1011_p0 }
  0x1d   : > { %p1019_p10 = pnand %p1018_p9, %p1012_p3 }
  0x1f   : > { %1022 = shalt.err (!%p1019_p10)
}
  0x20   : > { %s1431_s1 = sld [smem:[#allocation15_spill]]  ;;  %s1034_s16 = scalar_lea.vmem %s210_s9, 2048 }
  0x21   : > { %p1035_p1 = scmp.ne.s32.totalorder %s210_s9, %s1034_s16  ;;  %p1042_p13 = scmp.lt.s32.totalorder %s210_s9, %s210_s9 }
  0x22   : > { %p1043_p0 = scmp.lt.s32.totalorder %s1034_s16, %s1034_s16 }
  0x23   : > { %p1037_p2 = pnand %p1035_p1, %p999_p12 }
  0x24   : > { %p1044_p4 = por %p1043_p0, %p1042_p13 }
  0x25   : > { %p1038_p6 = pneg %p1037_p2 }
  0x26   : > { %888 = dma.hbm_to_vmem [thread:$0]  (!%p1271_p11), %s1431_s1, 32, %s200_s7, [#allocation6]  }
  0x27   : > { %p1045_p8 = pnand %p1044_p4, %p1038_p6 }
  0x29   : > { %1048 = shalt.err (!%p1045_p8)
}
  0x2a   : > { %s1180_s17 = smov 128   ;;  %s1181_s18 = smov 8  }
  0x2b   : > { %891 = dma.hbm_to_vmem [thread:$0]  (!%p1271_p11), %s1417_s2, 2048, %s210_s9, [#allocation6], %s1180_s17, %s1180_s17, %s1181_s18  }
  0x2c   : > { %s1060_s26 = scalar_lea.vmem %s226_s12, 2048  ;;  %p1068_p3 = scmp.lt.s32.totalorder %s226_s12, %s226_s12 }
  0x2d   : > { %p1061_p9 = scmp.ne.s32.totalorder %s226_s12, %s1060_s26  ;;  %p1069_p5 = scmp.lt.s32.totalorder %s1060_s26, %s1060_s26 }
  0x2f   : > { %p1063_p1 = pnand %p1061_p9, %p999_p12  ;;  %p1070_p4 = por %p1069_p5, %p1068_p3 }
  0x31   : > { %p1064_p2 = pneg %p1063_p1 }
  0x33   : > { %p1071_p6 = pnand %p1070_p4, %p1064_p2 }
  0x35   : > { %1074 = shalt.err (!%p1071_p6)
}
  0x36   : > { %s1182_s30 = smov 64   ;;  %s1183_s7 = smov 4  }
  0x37   : > { %894 = dma.hbm_to_vmem [thread:$0]  (!%p1271_p11), %s1419_s4, 2048, %s226_s12, [#allocation9], %s1182_s30, %s1182_s30, %s1183_s7  }
  0x38   : > { %s1302_s11 = sadd.s32 1, %s1175_s24   ;;  %s31_s14 = sadd.s32 1, %s1171_s23 }
  0x39   : > { %s28_s13 = ssub.s32 %s1175_s24, %s1302_s11  ;;  %p38_p12 = scmp.ne.s32.totalorder %s1171_s23, %s1167_s22 }
  0x3a   : > { %p29_p8 = scmp.eq.s32.totalorder %s28_s13, 0  ;;  %p39_p7 = scmp.eq.s32.totalorder %s1175_s24, 0 }
  0x3b   : > { %p906_p10 = scmp.lt.s32.totalorder %s1175_s24, 2  ;;  %p1432_p0 = scmp.eq.s32.totalorder %s1243_s25, 1 }
  0x3c   : > { %s1312_s15 = scalar_select %p29_p8, %s1171_s23, %s31_s14  }
  0x3d   : > { %p40_p13 = por %p39_p7, %p38_p12  ;;  %p1316_p9 = por %p1432_p0, %p38_p12 }
  0x3e   : > { %s242_s10 = sand.u32 1, %s1171_s23   ;;  %s801_s17 = sshll.u32 %s1175_s24, 7 }
  0x3f   : > { %s1433_s16 = scalar_select %p1316_p9, 1, 0 }
  0x40   : > { %s800_s12 = sshll.u32 %s242_s10, 3  ;;  %s1325_s20 = scalar_lea.hbm %s1415_s0, %s801_s17 }
  0x41   : > { %s246_s26 = scalar_lea.vmem [#allocation2], %s800_s12  ;;  %p1327_p11 = pnand %p906_p10, %p40_p13 }
  0x42   : > { %s253_s30 = sshll.u32 %s246_s26, 4  ;;  %s243_s8 = scalar_lea.sflag [#allocation3], %s242_s10  ;;  %s254_s30 = int_to_ptr.vmem [resolvable:$true] %s253_s30 }
  0x43   : > { %s1075_s9 = scalar_lea.hbm %s1325_s20, 128  ;;  %p1077_p2 = pneg %p1327_p11 }
  0x44   : > { %p1076_p1 = scmp.ne.s32.totalorder %s1325_s20, %s1075_s9  ;;  %s1080_s17 = scalar_lea.hbm %s1415_s0, 256 }
  0x45   : > { %p1081_p4 = scmp.lt.s32.totalorder %s1325_s20, %s1415_s0  ;;  %p1082_p6 = scmp.lt.s32.totalorder %s1080_s17, %s1075_s9 }
  0x46   : > { %p1078_p3 = pnand %p1077_p2, %p1076_p1 }
  0x47   : > { %p1083_p8 = por %p1082_p6, %p1081_p4 }
  0x48   : > { %p1079_p5 = pneg %p1078_p3 }
  0x4a   : > { %p1084_p12 = pnand %p1083_p8, %p1079_p5 }
  0x4c   : > { %1087 = shalt.err (!%p1084_p12)
}
  0x4d   : > { %s1088_s19 = scalar_lea.vmem %s254_s30, 128  ;;  %s1184_s10 = smov [#allocation2]  }
  0x4e   : > { %p1089_p7 = scmp.ne.s32.totalorder %s254_s30, %s1088_s19  ;;  %s1093_s26 = sshll.u32 %s1184_s10, 4  ;;  %s1094_s26 = int_to_ptr.vmem [resolvable:$false] %s1093_s26 }
  0x4f   : > { %s1095_s1 = scalar_lea.vmem %s1094_s26, 256  ;;  %p1096_p0 = scmp.lt.s32.totalorder %s254_s30, %s1094_s26 }
  0x50   : > { %p1091_p10 = pnand %p1089_p7, %p1077_p2  ;;  %p1097_p1 = scmp.lt.s32.totalorder %s1095_s1, %s1088_s19 }
  0x52   : > { %p1092_p13 = pneg %p1091_p10  ;;  %p1098_p3 = por %p1097_p1, %p1096_p0 }
  0x54   : > { %p1099_p9 = pnand %p1098_p3, %p1092_p13 }
  0x56   : > { %1102 = shalt.err (!%p1099_p9)
}
  0x57   : > { %898 = dma.hbm_to_vmem [thread:$0]  (!%p1327_p11), %s1325_s20, 128, %s254_s30, %s243_s8  }
  0x58   : > { %p1435_p5 = scmp.ne.s32.totalorder %s1429_s29, 0 }
  0x59   : > { %s1348_s9 = sand.u32 (!%p1435_p5), 1, %s1167_s22   ;;  %p1436_p2 = scmp.ne.s32.totalorder (!%p1435_p5), %s1427_s27, 0 }
  0x5a   : > { %262 = sbr.rel (%p1435_p5) target bundleno = 851 (0x353), region = 44  ;;  %s803_s13 = sshll.u32 (!%p1435_p5), %s1348_s9, 3 }
  0x5b   : > { %s265_s14 = scalar_lea.sflag (!%p1435_p5), [#allocation3], %s1348_s9  ;;  %s268_s1 = scalar_lea.vmem (!%p1435_p5), [#allocation2], %s803_s13 }
  0x5f   : > { %1146 = dma.done.wait (%p1436_p2), %s265_s14, 128  }
  0x60   : > { %1148 = vsyncadd (%p1436_p2), %s265_s14, 4294967168  ;;  %p1437_p9 = scmp.eq.s32.totalorder %s1243_s25, 0 }
  0x62   : > { %1150 = dma.done.wait (%p1437_p9), [#allocation6], 2080   ;;  %p1438_p11 = pmov %p1437_p9 }
  0x63   : > { %p1439_p4 = pmov %p1437_p9 }
  0x64   : > { %1152 = vsyncadd (%p1438_p11), [#allocation6], 4294965216 }
  0x65   : > { %1154 = dma.done.wait (%p1439_p4), [#allocation9], 2048   ;;  %p1440_p6 = pmov %p1439_p4 }
  0x66   : > { %v310_v0 = vld [vmem:[%s268_s1] sm:$0xff]  ;;  %v956_v4 = vld [vmem:[#allocation7 + $0x60] ss:$8 sps:$4 sm:$0xff]   ;;  %v1185_v16 = vmov 0   ;;  %v808_v26 = vld [vmem:[#allocation5] ss:$0 sm:$0xff]  ;;  %v354_v48 = vlaneseq }
  0x67   : > { %1156 = vsyncadd (%p1440_p6), [#allocation9], 4294965248  ;;  %311 = vadd.xlane.f32.xlu0 %v310_v0  ;;  %v951_v1 = vld [vmem:[#allocation7 + $0x74] ss:$8 sps:$4 sm:$0xff]   ;;  %v953_v2 = vld [vmem:[#allocation7 + $0x70] ss:$8 sps:$4 sm:$0xff]   ;;  %476 = vmatprep.mubr.bf16.mxu0 %v1185_v16 }
  0x68   : > { %v954_v3 = vld [vmem:[#allocation7 + $0x64] ss:$8 sps:$4 sm:$0xff]   ;;  %444 = vmatprep.subr.bf16.mxu0 %v951_v1  ;;  %v957_v9 = vld [vmem:[#allocation7 + $0x54] ss:$8 sps:$4 sm:$0xff]   ;;  %v959_v10 = vld [vmem:[#allocation7 + $0x50] ss:$8 sps:$4 sm:$0xff]  }
  0x69   : > { %445 = vmatpush1.bf16.msra.mxu0 %v953_v2  ;;  %v960_v11 = vld [vmem:[#allocation7 + $0x44] ss:$8 sps:$4 sm:$0xff]   ;;  %v962_v12 = vld [vmem:[#allocation7 + $0x40] ss:$8 sps:$4 sm:$0xff]   ;;  %v963_v13 = vld [vmem:[#allocation7 + $0x34] ss:$8 sps:$4 sm:$0xff]  }
  0x6a   : > { %446 = vmatprep.subr.bf16.mxu0 %v954_v3  ;;  %v965_v14 = vld [vmem:[#allocation7 + $0x30] ss:$8 sps:$4 sm:$0xff]   ;;  %v966_v15 = vld [vmem:[#allocation7 + $0x24] ss:$8 sps:$4 sm:$0xff]   ;;  %v968_v17 = vld [vmem:[#allocation7 + $0x20] ss:$8 sps:$4 sm:$0xff]  }
  0x6b   : > { %v969_v18 = vld [vmem:[#allocation7 + $0x14] ss:$8 sps:$4 sm:$0xff]   ;;  %v971_v19 = vld [vmem:[#allocation7 + $0x10] ss:$8 sps:$4 sm:$0xff]   ;;  %v972_v20 = vld [vmem:[#allocation7 + $0x4] ss:$8 sps:$4 sm:$0xff]  }
  0x6c   : > { %v974_v21 = vld [vmem:[#allocation7] ss:$8 sps:$4 sm:$0xff]   ;;  %v809_v28 = vld [vmem:[#allocation5 + $0x1] ss:$0 sm:$0xff]  ;;  %v977_v34 = vld [vmem:[#allocation8 + $0x70] sm:$0xff]   ;;  %v355_v49 = vshrl.u32 %v354_v48, 7 }
  0x6d   : > { %447 = vmatpush1.bf16.msra.mxu0 %v956_v4  ;;  %v975_v32 = vld [vmem:[#allocation8 + $0x78] sm:$0xff]   ;;  %v978_v35 = vld [vmem:[#allocation8 + $0x30] sm:$0xff]   ;;  %v979_v36 = vld [vmem:[#allocation8 + $0x68] sm:$0xff]   ;;  %s844_s7 = sshll.u32 %s1243_s25, 7  ;;  %s308_s8 = scalar_lea.vmem [#allocation10], %s803_s13 }
  0x6e   : > { %448 = vmatprep.subr.bf16.mxu0 %v957_v9  ;;  %v976_v33 = vld [vmem:[#allocation8 + $0x38] sm:$0xff]   ;;  %847 = vmatprep.subr.bf16.mxu1 %v975_v32  ;;  %v980_v37 = vld [vmem:[#allocation8 + $0x28] sm:$0xff]   ;;  %v981_v38 = vld [vmem:[#allocation8 + $0x60] sm:$0xff]   ;;  %v356_v50 = vsub.s32 0, %v355_v49  ;;  %v360_v52 = vsub.s32 1, %v355_v49  ;;  %s695_s17 = sshll.u32 %s308_s8, 4  ;;  %s1378_s19 = scalar_lea.hbm %s1421_s6, %s844_s7  ;;  %s696_s17 = int_to_ptr.vmem [resolvable:$true] %s695_s17 }
  0x6f   : > { %848 = vmatpush3.bf16.msra.mxu1 %v976_v33  ;;  %v982_v39 = vld [vmem:[#allocation8 + $0x20] sm:$0xff]   ;;  %v983_v40 = vld [vmem:[#allocation8 + $0x58] sm:$0xff]   ;;  %v985_v42 = vld [vmem:[#allocation8 + $0x50] sm:$0xff]   ;;  %s682_s10 = scalar_lea.sflag [#allocation4], %s1348_s9  ;;  %s1103_s26 = scalar_lea.vmem %s696_s17, 128 }
  0x70   : > { %849 = vmatprep.subr.bf16.mxu1 %v977_v34  ;;  %v984_v41 = vld [vmem:[#allocation8 + $0x18] sm:$0xff]   ;;  %v986_v43 = vld [vmem:[#allocation8 + $0x10] sm:$0xff]   ;;  %v987_v44 = vld [vmem:[#allocation8 + $0x48] sm:$0xff]   ;;  %p1104_p8 = scmp.ne.s32.totalorder %s696_s17, %s1103_s26  ;;  %p1441_p12 = scmp.ne.s32.totalorder %s1433_s16, 0 }
  0x71   : > { %449 = vmatpush1.bf16.msra.mxu0 %v959_v10  ;;  %v988_v45 = vld [vmem:[#allocation8 + $0x8] sm:$0xff]   ;;  %v989_v46 = vld [vmem:[#allocation8 + $0x40] sm:$0xff]   ;;  %s1186_s25 = smov [#allocation10]  }
  0x72   : > { %450 = vmatprep.subr.bf16.mxu0 %v960_v11  ;;  %v990_v47 = vld [vmem:[#allocation8] sm:$0xff]   ;;  %v352_v51 = vld [vmem:[%s1418_s3] sm:$0x3]  ;;  %p1105_p7 = pnand %p1104_p8, %p1441_p12  ;;  %s1107_s13 = sshll.u32 %s1186_s25, 4  ;;  %s1108_s13 = int_to_ptr.vmem [resolvable:$false] %s1107_s13 }
  0x73   : > { %850 = vmatpush3.bf16.msra.mxu1 %v978_v35  ;;  %v357_v53 = vrot.slane %v352_v51, %v356_v50  ;;  %v361_v54 = vrot.slane %v352_v51, %v360_v52  ;;  %s1109_s14 = scalar_lea.vmem %s1108_s13, 256  ;;  %p1110_p13 = scmp.lt.s32.totalorder %s696_s17, %s1108_s13 }
  0x74   : > { %851 = vmatprep.subr.bf16.mxu1 %v979_v36  ;;  %p1106_p10 = pneg %p1105_p7  ;;  %p1111_p0 = scmp.lt.s32.totalorder %s1109_s14, %s1103_s26 }
  0x75   : > { %451 = vmatpush1.bf16.msra.mxu0 %v962_v12 }
  0x76   : > { %452 = vmatprep.subr.bf16.mxu0 %v963_v13  ;;  %p1112_p1 = por %p1111_p0, %p1110_p13 }
  0x77   : > { %852 = vmatpush3.bf16.msra.mxu1 %v980_v37 }
  0x78   : > { %853 = vmatprep.subr.bf16.mxu1 %v981_v38  ;;  %p1113_p3 = pnand %p1112_p1, %p1106_p10 }
  0x79   : > { %453 = vmatpush1.bf16.msra.mxu0 %v965_v14 }
  0x7a   : > { %454 = vmatprep.subr.bf16.mxu0 %v966_v15 }
  0x7b   : > { %854 = vmatpush3.bf16.msra.mxu1 %v982_v39 }
  0x7c   : > { %855 = vmatprep.subr.bf16.mxu1 %v983_v40 }
  0x7d   : > { %455 = vmatpush1.bf16.msra.mxu0 %v968_v17 }
  0x7e   : > { %456 = vmatprep.subr.bf16.mxu0 %v969_v18  ;;  %v826_v18 = vld [vmem:[%s1420_s5] ss:$0 sm:$0xff] }
  0x7f   : > { %856 = vmatpush3.bf16.msra.mxu1 %v984_v41 }
  0x80   : > { %857 = vmatprep.subr.bf16.mxu1 %v985_v42 }
  0x81   : > { %457 = vmatpush1.bf16.msra.mxu0 %v971_v19 }
  0x82   : > { %458 = vmatprep.subr.bf16.mxu0 %v972_v20 }
  0x83   : > { %858 = vmatpush3.bf16.msra.mxu1 %v986_v43 }
  0x84   : > { %859 = vmatprep.subr.bf16.mxu1 %v987_v44 }
  0x85   : > { %459 = vmatpush1.bf16.msra.mxu0 %v974_v21 }
  0x87   : > { %860 = vmatpush3.bf16.msra.mxu1 %v988_v45 }
  0x88   : > { %861 = vmatprep.subr.bf16.mxu1 %v989_v46 }
  0x8b   : > { %862 = vmatpush3.bf16.msra.mxu1 %v990_v47 }
  0xf0   : > { %v312_v5 = vpop.xlane.xlu0 %311 }
  0xf1   : > { %v314_v6 = vmul.f32 0.0078125, %v312_v5 }
  0xf3   : > { %v315_v7 = vsub.f32 %v310_v0, %v314_v6 }
  0xf5   : > { %v316_v8 = vmul.f32 %v315_v7, %v315_v7 }
  0xf7   : > { %317 = vadd.xlane.f32.xlu0 %v316_v8 }
 0x180   : > { %v318_v22 = vpop.xlane.xlu0 %317 }
 0x181   : > { %v319_v23 = vmul.f32 0.0078125, %v318_v22 }
 0x183   : > { %v320_v24 = vadd.f32 1e-05, %v319_v23 }
 0x185   : > { %991 = vrsqrt.f32 %v320_v24 }
 0x192   : > { %v992_v25 = vpop.eup %991 }
 0x193   : > { %v322_v27 = vmul.f32 %v992_v25, %v315_v7 }
 0x195   : > { %v328_v29 = vmul.f32 %v808_v26, %v322_v27 }
 0x197   : > { %v334_v30 = vadd.f32 %v809_v28, %v328_v29 }
 0x199   : > { %v335_v31 = vpack.c.bf16 %v334_v30, %v334_v30 }
 0x19b   : > { %477 = vmatmul.mubr.bf16.vlgmr.msra.gmra.mxu0 %v335_v31 }
 0x25b   : > { %v478_v55 = vpop.f32.mrf.mxu0 }
 0x25c   : > { %v479_v56 = vadd.f32 %v478_v55, %v357_v53 }
 0x25d   : > { %v480_v57 = vpop.f32.mrf.mxu0 }
 0x25e   : > { %v487_v58 = vmul.f32 0.044715, %v479_v56  ;;  %v481_v59 = vadd.f32 %v480_v57, %v361_v54  ;;  %v485_v10 = vmul.f32 0.5, %v479_v56 }
 0x25f   : > { %v482_v60 = vpop.f32.mrf.mxu0 }
 0x260   : > { %v489_v61 = vmul.f32 %v487_v58, %v479_v56  ;;  %v488_v62 = vmul.f32 0.044715, %v481_v59  ;;  %v486_v11 = vmul.f32 0.5, %v481_v59 }
 0x261   : > { %v483_v63 = vpop.f32.mrf.mxu0 }
 0x262   : > { %v490_v0 = vmul.f32 %v488_v62, %v481_v59  ;;  %v491_v1 = vmul.f32 %v489_v61, %v479_v56 }
 0x264   : > { %v492_v2 = vmul.f32 %v490_v0, %v481_v59  ;;  %v493_v3 = vadd.f32 %v491_v1, %v479_v56 }
 0x266   : > { %v494_v4 = vadd.f32 %v492_v2, %v481_v59  ;;  %v495_v5 = vmul.f32 0.7978846, %v493_v3 }
 0x268   : > { %v496_v6 = vmul.f32 0.7978846, %v494_v4  ;;  %993 = vtanh.f32 %v495_v5 }
 0x26a   : > { %995 = vtanh.f32 %v496_v6 }
 0x275   : > { %v994_v7 = vpop.eup %993 }
 0x276   : > { %v499_v8 = vadd.f32 1.0, %v994_v7 }
 0x277   : > { %v996_v9 = vpop.eup %995 }
 0x278   : > { %v500_v12 = vadd.f32 1.0, %v996_v9  ;;  %v501_v13 = vmul.f32 %v499_v8, %v485_v10 }
 0x27a   : > { %v502_v14 = vmul.f32 %v500_v12, %v486_v11  ;;  %v503_v16 = vpack.c.bf16 %v501_v13, %v501_v13 }
 0x27c   : > { %v504_v15 = vpack.c.bf16 %v502_v14, %v502_v14 }
 0x27e   : > { %672 = vmatprep.mubr.bf16.mxu1 %v504_v15 }
 0x27f   : > { %673 = vmatmul.mubr.bf16.vlgmr.msra.gmra.mxu1 %v503_v16 }
 0x33f   : > { %v863_v17 = vpop.f32.mrf.mxu1 }
 0x341   : > { %v864_v19 = vpop.f32.mrf.mxu1 }
 0x342   : > { %v865_v20 = vadd.f32 %v864_v19, %v863_v17 }
 0x343   : > { %v866_v21 = vpop.f32.mrf.mxu1 }
 0x344   : > { %v675_v22 = vadd.f32 %v865_v20, %v826_v18 }
 0x345   : > { %v867_v23 = vpop.f32.mrf.mxu1 }
 0x346   : > { %680 = vst [vmem:[%s308_s8] sm:$0xff] %v675_v22 }
 0x347   : > { %1116 = shalt.err (!%p1113_p3)
}
 0x348   : > { %s1117_s1 = scalar_lea.hbm %s1378_s19, 128  ;;  %s1121_s29 = scalar_lea.hbm %s1421_s6, 256 }
 0x349   : > { %p1118_p5 = scmp.ne.s32.totalorder %s1378_s19, %s1117_s1  ;;  %p1122_p11 = scmp.lt.s32.totalorder %s1378_s19, %s1421_s6 }
 0x34a   : > { %p1123_p4 = scmp.lt.s32.totalorder %s1121_s29, %s1117_s1 }
 0x34b   : > { %p1119_p2 = pnand %p1118_p5, %p1441_p12 }
 0x34c   : > { %p1124_p6 = por %p1123_p4, %p1122_p11 }
 0x34d   : > { %p1120_p9 = pneg %p1119_p2 }
 0x34f   : > { %p1125_p8 = pnand %p1124_p6, %p1120_p9 }
 0x351   : > { %1128 = shalt.err (!%p1125_p8)
}
 0x352   : > { %883 = dma.vmem_to_hbm [thread:$0]  (%p1441_p12), %s696_s17, 128, %s1378_s19, %s682_s10  }
 0x353 PF: > { %s707_s7 = sand.u32 1, %s1163_s21   ;;  %p1442_p7 = scmp.ne.s32.totalorder %s1428_s28, 0 }
 0x354   : > { %p1443_p10 = scmp.ge.s32.totalorder %s1175_s24, 2  ;;  %s708_s8 = scalar_lea.sflag [#allocation4], %s707_s7 }
 0x356   : > { %p900_p13 = pnand %p1443_p10, %p1442_p7 }
 0x358   : > { %p901_p0 = pneg %p900_p13 }
 0x35a   : > { %1158 = dma.done.wait (%p901_p0), %s708_s8, 128  }
 0x35b   : > { %1160 = vsyncadd (%p901_p0), %s708_s8, 4294967168  ;;  %p21_p1 = scmp.ge.s32.totalorder %s1302_s11, 4   ;;  %s1444_s21 = smov %s1167_s22 }
 0x35c   : > { %s1445_s22 = smov %s1171_s23  ;;  %s1446_s23 = smov %s1312_s15 }
 0x35d   : > { %s1447_s24 = smov %s1302_s11  ;;  %23 = sbr.rel (!%p21_p1) target bundleno = 9 (0x9), region = 101 }
 0x362   :  { %713 = vsyncpa [#allocation3], 1 }
 0x363   :  { %715 = vsyncpa [#allocation3 + $0x1], 1 }
 0x364   :  { %716 = vsyncpa [#allocation6], 1 }
 0x365   :  { %717 = vsyncpa [#allocation9], 1 }
 0x366   :  { %718 = vsyncpa [#allocation4], 1 }
 0x367   :  { %720 = vsyncpa [#allocation4 + $0x1], 1 }

</bundles_post_ra>
